<compile_context>
chip_gen: v5e
topology: v5e:2x2
jax: 0.10.0
libtpu: 0.0.40
codegen_flags: <defaults>
</compile_context>

<pallas_src>
import functools

import jax
import jax.numpy as jnp
from jax.experimental import pallas as pl
from jax.experimental.pallas import tpu as pltpu


def _kl_soft_label_kernel(logits_ref, target_ref, out_ref, *, inv_temp):
    """One grid step: (tile_n, C) slab -> one partial KL sum.

    logits_ref, target_ref : VMEM (tile_n, C)
    out_ref                : SMEM (1, 1) partial sum for this tile
    """
    x = logits_ref[...].astype(jnp.float32) * inv_temp   # logits / T
    t = target_ref[...].astype(jnp.float32) * inv_temp   # soft_target / T

    # log_softmax(logits / T) over the class (lane) axis, numerically stable.
    x_max = jnp.max(x, axis=-1, keepdims=True)
    x_sh = x - x_max
    sum_exp_x = jnp.sum(jnp.exp(x_sh), axis=-1, keepdims=True)
    log_q = x_sh - jnp.log(sum_exp_x)

    # softmax(soft_target / T) and its log; reuse exp_t for p instead of a
    # third full-size exp(log_p).
    t_max = jnp.max(t, axis=-1, keepdims=True)
    t_sh = t - t_max
    exp_t = jnp.exp(t_sh)
    sum_exp_t = jnp.sum(exp_t, axis=-1, keepdims=True)
    log_p = t_sh - jnp.log(sum_exp_t)
    p = exp_t * pl.reciprocal(sum_exp_t)   # exact reciprocal keeps rtol ~1e-5

    # KLDivLoss elementwise term: target * (log(target) - input)
    kl = p * (log_p - log_q)

    # Per-tile partial sum; no carried state => batch grid axis is "parallel".
    out_ref[0, 0] = jnp.sum(kl)


def _choose_tile_n(n, c, *, itemsize=4, target_bytes=2 * 1024 * 1024,
                   max_tile_n=2048):
    """Pick a row-tile that is a multiple of 8 and ~target_bytes of f32."""
    n8 = ((n + 7) // 8) * 8
    rows = target_bytes // max(1, c * itemsize)
    rows = max(8, min(max_tile_n, (rows // 8) * 8))
    if n8 <= rows:
        return n8                       # single tile covers the whole batch
    num_tiles = -(-n // rows)           # ceil
    tile = -(-n // num_tiles)           # balance tiles to minimise padding
    return ((tile + 7) // 8) * 8


def kl_with_soft_label_loss(logits, soft_target, temperature, weight,
                            *, tile_n=None):
    """Pallas implementation of KLWithSoftLabelLoss.forward for (N, C) inputs."""
    assert logits.shape == soft_target.shape and logits.ndim == 2
    N, C = logits.shape
    temperature = float(temperature)
    weight = float(weight)

    if tile_n is None:
        tile_n = _choose_tile_n(N, C)

    # Zero-pad the batch to a multiple of tile_n; zero rows contribute exactly
    # 0 to the KL sum (identical log_p / log_q), so the result is unchanged.
    n_pad = (-N) % tile_n
    if n_pad:
        logits = jnp.pad(logits, ((0, n_pad), (0, 0)))
        soft_target = jnp.pad(soft_target, ((0, n_pad), (0, 0)))
    num_tiles = (N + n_pad) // tile_n

    kernel = functools.partial(_kl_soft_label_kernel,
                               inv_temp=1.0 / temperature)  # Python float literal

    partials = pl.pallas_call(
        kernel,
        out_shape=jax.ShapeDtypeStruct((num_tiles, 1), jnp.float32),
        grid_spec=pltpu.PrefetchScalarGridSpec(
            num_scalar_prefetch=0,
            grid=(num_tiles,),
            in_specs=[
                pl.BlockSpec((tile_n, C), lambda i: (i, 0)),
                pl.BlockSpec((tile_n, C), lambda i: (i, 0)),
            ],
            out_specs=pl.BlockSpec((1, 1), lambda i: (i, 0),
                                   memory_space=pltpu.MemorySpace.SMEM),
        ),
        compiler_params=pltpu.CompilerParams(
            dimension_semantics=("parallel",),      # independent tiles -> both TCs on v7x
            vmem_limit_bytes=48 * 1024 * 1024,      # safe on v5e/v6e (128 MiB) and v7x (64 MiB)
        ),
    )(logits, soft_target)

    # batchmean over the ORIGINAL batch size, then * T^2 * weight.
    final_scale = (temperature * temperature * weight) / float(N)
    return jnp.sum(partials) * final_scale


def _reference(logits, soft_target, temperature, weight):
    """Pure-JAX reference matching the PyTorch module."""
    log_q = jax.nn.log_softmax(logits / temperature, axis=1)
    log_p = jax.nn.log_softmax(soft_target / temperature, axis=1)
    p = jnp.exp(log_p)
    kl = p * (log_p - log_q)
    return jnp.sum(kl) / logits.shape[0] * (temperature * temperature * weight)


if __name__ == "__main__":
    # Module buffers from __init__(temperature, weight).
    temperature = 4.0
    loss_weight = 0.7

    key = jax.random.PRNGKey(0)
    k1, k2 = jax.random.split(key)
    # Small, TPU-friendly (N, C): class dim (PyTorch dim=1) on the lane axis.
    # N=12 deliberately exercises the zero-padding remainder path.
    N, C = 12, 128
    logits = jax.random.normal(k1, (N, C), dtype=jnp.float32)
    soft_target = jax.random.normal(k2, (N, C), dtype=jnp.float32)

    loss = kl_with_soft_label_loss(logits, soft_target, temperature, loss_weight)
    loss = jax.block_until_ready(loss)

    ref = _reference(logits, soft_target, temperature, loss_weight)
    assert jnp.allclose(loss, ref, rtol=1e-4, atol=1e-5), (loss, ref)

    print("KERNEL_OK")
</pallas_src>

<mosaic_0001>
module attributes {stable_mosaic.version = 11 : i64} {
  func.func @_kl_soft_label_kernel(%arg0: i32, %arg1: memref<16x128xf32, #tpu.memory_space<vmem>>, %arg2: memref<16x128xf32, #tpu.memory_space<vmem>>, %arg3: memref<1x1xf32, #tpu.memory_space<smem>>) attributes {dimension_semantics = [#tpu.dimension_semantics<parallel>], iteration_bounds = array<i64: 1>, scalar_prefetch = 0 : i64, scratch_operands = 0 : i64, tpu.core_type = #tpu.core_type<tc>, window_params = [{transform_indices = @transform_0, window_bounds = array<i64: 16, 128>}, {transform_indices = @transform_1, window_bounds = array<i64: 16, 128>}, {transform_indices = @transform_2, window_bounds = array<i64: 1, 1>}]} {
    %c0 = arith.constant 0 : index
    %c0_0 = arith.constant 0 : index
    %0 = vector.load %arg1[%c0, %c0_0] : memref<16x128xf32, #tpu.memory_space<vmem>>, vector<16x128xf32>
    %cst = arith.constant 2.500000e-01 : f32
    %1 = vector.broadcast %cst : f32 to vector<16x128xf32>
    %2 = arith.mulf %0, %1 : vector<16x128xf32>
    %c0_1 = arith.constant 0 : index
    %c0_2 = arith.constant 0 : index
    %3 = vector.load %arg2[%c0_1, %c0_2] : memref<16x128xf32, #tpu.memory_space<vmem>>, vector<16x128xf32>
    %cst_3 = arith.constant 2.500000e-01 : f32
    %4 = vector.broadcast %cst_3 : f32 to vector<16x128xf32>
    %5 = arith.mulf %3, %4 : vector<16x128xf32>
    %cst_4 = arith.constant dense<0xFF800000> : vector<16xf32>
    %6 = vector.multi_reduction <maximumf>, %2, %cst_4 [1] : vector<16x128xf32> to vector<16xf32>
    %7 = vector.shape_cast %6 : vector<16xf32> to vector<16x1xf32>
    %8 = vector.broadcast %7 : vector<16x1xf32> to vector<16x128xf32>
    %9 = arith.subf %2, %8 : vector<16x128xf32>
    %10 = math.exp %9 : vector<16x128xf32>
    %cst_5 = arith.constant dense<0.000000e+00> : vector<16xf32>
    %11 = vector.multi_reduction <add>, %10, %cst_5 [1] : vector<16x128xf32> to vector<16xf32>
    %12 = vector.shape_cast %11 : vector<16xf32> to vector<16x1xf32>
    %13 = math.log %12 : vector<16x1xf32>
    %14 = vector.broadcast %13 : vector<16x1xf32> to vector<16x128xf32>
    %15 = arith.subf %9, %14 : vector<16x128xf32>
    %cst_6 = arith.constant dense<0xFF800000> : vector<16xf32>
    %16 = vector.multi_reduction <maximumf>, %5, %cst_6 [1] : vector<16x128xf32> to vector<16xf32>
    %17 = vector.shape_cast %16 : vector<16xf32> to vector<16x1xf32>
    %18 = vector.broadcast %17 : vector<16x1xf32> to vector<16x128xf32>
    %19 = arith.subf %5, %18 : vector<16x128xf32>
    %20 = math.exp %19 : vector<16x128xf32>
    %cst_7 = arith.constant dense<0.000000e+00> : vector<16xf32>
    %21 = vector.multi_reduction <add>, %20, %cst_7 [1] : vector<16x128xf32> to vector<16xf32>
    %22 = vector.shape_cast %21 : vector<16xf32> to vector<16x1xf32>
    %23 = math.log %22 : vector<16x1xf32>
    %24 = vector.broadcast %23 : vector<16x1xf32> to vector<16x128xf32>
    %25 = arith.subf %19, %24 : vector<16x128xf32>
    %26 = tpu.reciprocal %22 : vector<16x1xf32> -> vector<16x1xf32>
    %27 = vector.broadcast %26 : vector<16x1xf32> to vector<16x128xf32>
    %28 = arith.mulf %20, %27 : vector<16x128xf32>
    %29 = arith.subf %25, %15 : vector<16x128xf32>
    %30 = arith.mulf %28, %29 : vector<16x128xf32>
    %31 = vector.shape_cast %30 : vector<16x128xf32> to vector<1x16x128xf32>
    %cst_8 = arith.constant dense<0.000000e+00> : vector<1xf32>
    %32 = vector.multi_reduction <add>, %31, %cst_8 [1, 2] : vector<1x16x128xf32> to vector<1xf32>
    %33 = vector.shape_cast %32 : vector<1xf32> to vector<1x1x1xf32>
    %34 = vector.extract %33[0, 0, 0] : f32 from vector<1x1x1xf32>
    %c0_9 = arith.constant 0 : index
    %c0_10 = arith.constant 0 : index
    %35 = memref.load %arg3[%c0_9, %c0_10] : memref<1x1xf32, #tpu.memory_space<smem>>
    memref.store %34, %arg3[%c0_9, %c0_10] : memref<1x1xf32, #tpu.memory_space<smem>>
    return
  }
  func.func @transform_0(%arg0: i32) -> (i32, i32) {
    %c0_i32 = arith.constant 0 : i32
    %c0_i32_0 = arith.constant 0 : i32
    return %arg0, %c0_i32 : i32, i32
  }
  func.func @transform_1(%arg0: i32) -> (i32, i32) {
    %c0_i32 = arith.constant 0 : i32
    %c0_i32_0 = arith.constant 0 : i32
    return %arg0, %c0_i32 : i32, i32
  }
  func.func @transform_2(%arg0: i32) -> (i32, i32) {
    %c0_i32 = arith.constant 0 : i32
    %c0_i32_0 = arith.constant 0 : i32
    return %arg0, %c0_i32 : i32, i32
  }
}

</mosaic_0001>

<bundles_post_ra>
// kernel: tpu_custom_call.1
= control target key start
LH: loop header
LB: loop body
LE: loop exit
PB: predicated region body
PF: predicated region fallthrough
CT: control target
= control target key end

     0   :  { %7 = vsyncpa [#allocation3], 0  ;;  %s293_s0 = inlined_call_operand.hbm [shape: f32[16,128], index: 0, kind: input, shape index: {}]   ;;  %s294_s1 = inlined_call_operand.hbm [shape: f32[16,128], index: 1, kind: input, shape index: {}]   ;;  %s295_s2 = inlined_call_operand.hbm [shape: f32[1,1], index: 2, kind: output, shape index: {}]  }
   0x1   :  { %8 = vsyncpa [#allocation6], 0 }
   0x2   :  { %9 = vsyncpa [#allocation4], 0  ;;  %s14_s11 = sshll.u32 %s293_s0, 4  ;;  %s248_s12 = smov [#allocation2]   ;;  %s15_s11 = int_to_ptr.hbm [resolvable:$true] %s14_s11 }
   0x3   :  { %s16_s13 = sshll.u32 %s248_s12, 4  ;;  %s27_s16 = sshll.u32 %s294_s1, 4  ;;  %s17_s13 = int_to_ptr.vmem [resolvable:$true] %s16_s13  ;;  %s28_s16 = int_to_ptr.hbm [resolvable:$true] %s27_s16 }
   0x4   :  { %s249_s17 = smov 128   ;;  %s250_s18 = smov 8  }
   0x5   :  { %22 = dma.hbm_to_vmem [thread:$0]  %s15_s11, 256, %s17_s13, [#allocation3], %s249_s17, %s249_s17, %s250_s18  }
   0x6   :  { %s251_s19 = smov [#allocation5]  }
   0x7   :  { %s29_s20 = sshll.u32 %s251_s19, 4  ;;  %s30_s20 = int_to_ptr.vmem [resolvable:$true] %s29_s20 }
   0x8   :  { %35 = dma.hbm_to_vmem [thread:$0]  %s28_s16, 256, %s30_s20, [#allocation6], %s249_s17, %s249_s17, %s250_s18  }
   0x9   :  { %242 = dma.done.wait [#allocation3], 256  }
   0xa   :  { %243 = vsyncadd [#allocation3], 4294967040 }
   0xb   :  { %244 = dma.done.wait [#allocation6], 256  }
   0xc   :  { %245 = vsyncadd [#allocation6], 4294967040  ;;  %v48_v0 = vld [vmem:[#allocation5] sm:$0xff]  ;;  %v44_v1 = vld [vmem:[#allocation2] sm:$0xff]  ;;  %s143_s21 = sshll.u32 %s295_s2, 4  ;;  %s252_s23 = smov [#allocation7]   ;;  %s144_s21 = int_to_ptr.hbm [resolvable:$true] %s143_s21 }
   0xd   :  { %v50_v2 = vmul.f32 0.25, %v48_v0  ;;  %v46_v3 = vmul.f32 0.25, %v44_v1  ;;  %v49_v4 = vld [vmem:[#allocation5 + $0x8] sm:$0xff]  ;;  %v45_v5 = vld [vmem:[#allocation2 + $0x8] sm:$0xff] }
   0xe   :  { %v51_v6 = vmul.f32 0.25, %v49_v4  ;;  %v47_v7 = vmul.f32 0.25, %v45_v5 }
   0xf   :  { %72 = vmax.xlane.f32.xlu0 %v50_v2  ;;  %52 = vmax.xlane.f32.xlu1 %v46_v3 }
  0x17   :  { %74 = vmax.xlane.f32.xlu0 %v51_v6  ;;  %54 = vmax.xlane.f32.xlu1 %v47_v7 }
  0x82   :  { %v73_v8 = vpop.xlane.xlu0 %72  ;;  %v53_v9 = vpop.xlane.xlu1 %52 }
  0x83   :  { %v274_v10 = vsub.f32 %v50_v2, %v73_v8  ;;  %v276_v11 = vsub.f32 %v46_v3, %v53_v9 }
  0x85   :  { %v78_v12 = vmul.f32 1.442695, %v274_v10  ;;  %v58_v13 = vmul.f32 1.442695, %v276_v11 }
  0x87   :  { %162 = vpow2.f32 %v78_v12 }
  0x88   :  { %164 = vpow2.f32 %v58_v13 }
  0x8a   :  { %v75_v14 = vpop.xlane.xlu0 %74  ;;  %v55_v15 = vpop.xlane.xlu1 %54 }
  0x8b   :  { %v280_v16 = vsub.f32 %v51_v6, %v75_v14  ;;  %v282_v17 = vsub.f32 %v47_v7, %v55_v15 }
  0x8d   :  { %v163_v18 = vpop.eup %162  ;;  %v80_v19 = vmul.f32 1.442695, %v280_v16  ;;  %v60_v20 = vmul.f32 1.442695, %v282_v17 }
  0x8e   :  { %v165_v21 = vpop.eup %164  ;;  %82 = vadd.xlane.f32.xlu2 %v163_v18 }
  0x8f   :  { %166 = vpow2.f32 %v80_v19  ;;  %62 = vadd.xlane.f32.xlu0 %v165_v21 }
  0x90   :  { %168 = vpow2.f32 %v60_v20 }
  0x95   :  { %v167_v22 = vpop.eup %166 }
  0x96   :  { %v169_v23 = vpop.eup %168  ;;  %84 = vadd.xlane.f32.xlu2 %v167_v22 }
  0x97   :  { %64 = vadd.xlane.f32.xlu1 %v169_v23 }
 0x101   :  { %v83_v24 = vpop.xlane.xlu2 %82 }
 0x102   :  { %170 = vrcp.f32 %v83_v24  ;;  %v63_v25 = vpop.xlane.xlu0 %62  ;;  %v103_v36 = vand.u32 2147483648, %v83_v24  ;;  %vm97_vm1 = vweird.f32 %v83_v24  ;;  %v101_v39 = vand.u32 2147483647, %v83_v24 }
 0x103   :  { %172 = vlog2.f32 %v63_v25 }
 0x104   :  { %174 = vlog2.f32 %v83_v24  ;;  %v104_v47 = vor.u32 1.1754944e-38, %v103_v36  ;;  %vm102_vm3 = vcmp.eq.f32.partialorder %v101_v39, 8.507059e+37 }
 0x108   :  { %v171_v26 = vpop.eup %170 }
 0x109   :  { %v93_v27 = vmul.f32 %v171_v26, %v83_v24  ;;  %v85_v28 = vpop.xlane.xlu2 %84  ;;  %v173_v32 = vpop.eup %172  ;;  %vm98_vm0 = vweird.f32 %v171_v26 }
 0x10a   :  { %176 = vrcp.f32 %v85_v28  ;;  %v65_v29 = vpop.xlane.xlu1 %64  ;;  %v175_v33 = vpop.eup %174  ;;  %v67_v41 = vmul.f32 0.6931472, %v173_v32  ;;  %vm99_vm2 = vmor %vm97_vm1, %vm98_vm0  ;;  %v117_v48 = vand.u32 2147483648, %v85_v28  ;;  %v115_v50 = vand.u32 2147483647, %v85_v28 }
 0x10b   :  { %v94_v30 = vsub.f32 1.0, %v93_v27  ;;  %178 = vlog2.f32 %v65_v29  ;;  %v87_v42 = vmul.f32 0.6931472, %v175_v33  ;;  %vm111_vm5 = vweird.f32 %v85_v28 }
 0x10c   :  { %180 = vlog2.f32 %v85_v28  ;;  %v70_v51 = vsub.f32 %v276_v11, %v67_v41  ;;  %v118_v57 = vor.u32 1.1754944e-38, %v117_v48  ;;  %vm116_vm7 = vcmp.eq.f32.partialorder %v115_v50, 8.507059e+37 }
 0x10d   :  { %v95_v31 = vmul.f32 %v171_v26, %v94_v30  ;;  %v90_v54 = vsub.f32 %v274_v10, %v87_v42 }
 0x10f   :  { %v96_v34 = vadd.f32 %v171_v26, %v95_v31  ;;  %v122_v62 = vsub.f32 %v90_v54, %v70_v51 }
 0x110   :  { %v177_v35 = vpop.eup %176 }
 0x111   :  { %v179_v37 = vpop.eup %178  ;;  %v107_v38 = vmul.f32 %v177_v35, %v85_v28  ;;  %v100_v46 = vsel %vm99_vm2, %v171_v26, %v96_v34  ;;  %vm112_vm4 = vweird.f32 %v177_v35 }
 0x112   :  { %v181_v40 = vpop.eup %180  ;;  %v69_v44 = vmul.f32 0.6931472, %v179_v37  ;;  %v105_v52 = vsel %vm102_vm3, %v104_v47, %v100_v46  ;;  %vm113_vm6 = vmor %vm111_vm5, %vm112_vm4 }
 0x113   :  { %v108_v43 = vsub.f32 1.0, %v107_v38  ;;  %v89_v45 = vmul.f32 0.6931472, %v181_v40  ;;  %v120_v59 = vmul.f32 %v163_v18, %v105_v52 }
 0x114   :  { %v71_v53 = vsub.f32 %v282_v17, %v69_v44 }
 0x115   :  { %v109_v49 = vmul.f32 %v177_v35, %v108_v43  ;;  %v91_v55 = vsub.f32 %v280_v16, %v89_v45  ;;  %v124_v0 = vmul.f32 %v122_v62, %v120_v59 }
 0x117   :  { %v110_v56 = vadd.f32 %v177_v35, %v109_v49  ;;  %v123_v63 = vsub.f32 %v91_v55, %v71_v53 }
 0x119   :  { %v114_v58 = vsel %vm113_vm6, %v177_v35, %v110_v56 }
 0x11a   :  { %v119_v60 = vsel %vm116_vm7, %v118_v57, %v114_v58 }
 0x11b   :  { %v121_v61 = vmul.f32 %v167_v22, %v119_v60 }
 0x11d   :  { %v125_v1 = vmul.f32 %v123_v63, %v121_v61 }
 0x11f   :  { %v126_v2 = vadd.f32 %v125_v1, %v124_v0 }
 0x121   :  { %127 = vadd.xlane.f32.xlu2 %v126_v2 }
 0x194   :  { %v128_v3 = vpop.xlane.xlu2 %127 }
 0x195   :  { %v129_v4 = vrot.slane %v128_v3, 4 }
 0x197   :  { %v130_v5 = vadd.f32 %v129_v4, %v128_v3 }
 0x199   :  { %v131_v6 = vrot.slane %v130_v5, 2 }
 0x19b   :  { %v132_v7 = vadd.f32 %v131_v6, %v130_v5 }
 0x19d   :  { %v133_v8 = vrot.slane %v132_v7, 1 }
 0x19f   :  { %v134_v9 = vadd.f32 %v133_v8, %v132_v7 }
 0x1a1   :  { %155 = vpush %v134_v9 }
 0x1d2   :  { %s156_s22 = spop %155 }
 0x1d3   :  { %137 = sst [smem:[#allocation7]] %s156_s22 }
 0x1d4   :  { %146 = dma.smem_to_hbm %s252_s23, 16, %s144_s21, [#allocation4]  }
 0x1d5   :  { %246 = dma.done.wait [#allocation4], 16  }
 0x1d6   :  { %247 = vsyncadd [#allocation4], 4294967280 }
 0x1d7   :  { %151 = sfence }
 0x1d8   :  { %152 = vsyncpa [#allocation3], 1 }
 0x1d9   :  { %153 = vsyncpa [#allocation6], 1 }
 0x1da   :  { %154 = vsyncpa [#allocation4], 1 }

</bundles_post_ra>
